<compile_context>
chip_gen: v7x
topology: tpu7x:2x2x1
jax: 0.10.0
libtpu: 0.0.40
codegen_flags: <defaults>
</compile_context>

<pallas_src>
import functools

import jax
import jax.numpy as jnp
from jax import lax
from jax.experimental import pallas as pl
from jax.experimental.pallas import tpu as pltpu

NUM_CLASSES = 3
CLS_PAD = 64            # padded class width; packed output width = 2*CLS_PAD = 128 lanes
H1, H2 = 512, 256       # hidden widths of the original (un-fused) module


def _round_up(n, m):
    return (n + m - 1) // m * m


def phobert_classi_kernel(x_ref, wf_ref, bf_ref, out_ref):
    # dropout: identity in eval mode (no-op)
    x = x_ref[...]

    # Single fused linear: (tb, D) @ (D, CLS_PAD) + (1, CLS_PAD), f32 accumulation.
    logits = jnp.dot(x, wf_ref[...], preferred_element_type=jnp.float32) + bf_ref[...]

    # Masked softmax over the 3 valid classes (padded cols of Wf/bf are exactly 0,
    # so the mask is what excludes them).
    col = lax.broadcasted_iota(jnp.int32, logits.shape, dimension=1)
    masked = jnp.where(col < NUM_CLASSES, logits, -jnp.inf)
    m = jnp.max(masked, axis=-1, keepdims=True)
    e = jnp.exp(masked - m)
    denom = jnp.sum(e, axis=-1, keepdims=True)
    soft = e * pl.reciprocal(denom, approx=True)

    # Packed lane-dense (tb, 128) output: logits in cols [0:CLS_PAD], softmax after.
    out_ref[:, :CLS_PAD] = logits
    out_ref[:, CLS_PAD:] = soft


def fuse_params(raw_params):
    """Collapse the 3 chained linears into (Wf, bf), zero-padded to CLS_PAD classes."""
    w1, b1, w2, b2, w3, b3 = raw_params          # weights stored as (in, out)
    wf = (w1 @ w2) @ w3                          # (D, 3)
    bf = (b1 @ w2 + b2) @ w3 + b3                # (1, 3)
    d = wf.shape[0]
    wf_p = jnp.zeros((d, CLS_PAD), jnp.float32).at[:, :NUM_CLASSES].set(wf)
    bf_p = jnp.zeros((1, CLS_PAD), jnp.float32).at[:, :NUM_CLASSES].set(bf)
    return wf_p, bf_p


@functools.partial(jax.jit, static_argnames=("block_b", "compute_dtype"))
def phobert_classi(x, wf_p, bf_p, *, block_b=256, compute_dtype=jnp.bfloat16):
    """x: (B, 2*embedding_dim) float32. Returns (logits (B,3), softmax (B,3))."""
    B, D = x.shape
    assert block_b % 8 == 0

    # Batch tile: as large as possible (up to block_b), padded to a multiple of 8.
    bb = min(block_b, _round_up(B, 8))
    b_pad = _round_up(B, bb)
    if b_pad != B:
        x = jnp.pad(x, ((0, b_pad - B), (0, 0)))

    # bf16 (or f32) matmul operands; bias-add / softmax stay f32 in-kernel.
    x_c = x.astype(compute_dtype)
    wf_c = wf_p.astype(compute_dtype)

    packed = pl.pallas_call(
        phobert_classi_kernel,
        out_shape=jax.ShapeDtypeStruct((b_pad, 2 * CLS_PAD), jnp.float32),
        grid_spec=pltpu.PrefetchScalarGridSpec(
            num_scalar_prefetch=0,
            grid=(b_pad // bb,),
            in_specs=[
                pl.BlockSpec((bb, D), lambda i: (i, 0)),
                pl.BlockSpec((D, CLS_PAD), lambda i: (0, 0)),     # fused weight (constant)
                pl.BlockSpec((1, CLS_PAD), lambda i: (0, 0)),     # fused bias (constant)
            ],
            out_specs=pl.BlockSpec((bb, 2 * CLS_PAD), lambda i: (i, 0)),
        ),
        compiler_params=pltpu.CompilerParams(
            # Independent batch tiles -> shard across TensorCores (v7x megacore).
            dimension_semantics=("parallel",),
        ),
    )(x_c, wf_c, bf_p)

    logits = packed[:B, :NUM_CLASSES]
    soft = packed[:B, CLS_PAD:CLS_PAD + NUM_CLASSES]
    return logits, soft


def init_params(key, in_dim):
    """Deterministic synthetic parameters (PyTorch-Linear-like uniform init),
    stored pre-transposed as (in_features, out_features)."""
    ks = jax.random.split(key, 6)

    def lin(kw, kb, fan_in, fan_out):
        bound = 1.0 / jnp.sqrt(fan_in)
        w = jax.random.uniform(kw, (fan_in, fan_out), jnp.float32, -bound, bound)
        b = jax.random.uniform(kb, (1, fan_out), jnp.float32, -bound, bound)
        return w, b

    w1, b1 = lin(ks[0], ks[1], in_dim, H1)
    w2, b2 = lin(ks[2], ks[3], H1, H2)
    w3, b3 = lin(ks[4], ks[5], H2, NUM_CLASSES)
    return (w1, b1, w2, b2, w3, b3)


def reference(x, raw_params):
    """Chained f32 reference matching the PyTorch forward (eval mode)."""
    w1, b1, w2, b2, w3, b3 = raw_params
    h = x @ w1 + b1
    h = h @ w2 + b2
    out = h @ w3 + b3
    return out, jax.nn.softmax(out, axis=-1)   # F.softmax on 2-D -> last dim


if __name__ == "__main__":
    embedding_dim = 32           # config['embedding']['embedding_dim']
    in_dim = embedding_dim * 2   # linear1 input = embedding_dim * 2
    batch = 200                  # non-multiple of the tile -> exercises batch padding

    key = jax.random.PRNGKey(0)
    k_x, k_p = jax.random.split(key)
    x = jax.random.normal(k_x, (batch, in_dim), dtype=jnp.float32)

    raw_params = init_params(k_p, in_dim)
    wf_p, bf_p = fuse_params(raw_params)

    ref_out, ref_soft = reference(x, raw_params)

    # f32 compute path: matmul fusion is mathematically exact (fp rounding only).
    out32, soft32 = phobert_classi(x, wf_p, bf_p, block_b=128,
                                   compute_dtype=jnp.float32)
    jax.block_until_ready((out32, soft32))
    assert out32.shape == (batch, NUM_CLASSES) and soft32.shape == (batch, NUM_CLASSES)
    assert jnp.allclose(out32, ref_out, atol=1e-4, rtol=1e-4)
    assert jnp.allclose(soft32, ref_soft, atol=1e-2)   # approx reciprocal in softmax

    # bf16 compute path (v6e/v7x MXU-native; f32 accumulation, f32 bias/softmax).
    out16, soft16 = phobert_classi(x, wf_p, bf_p, block_b=128,
                                   compute_dtype=jnp.bfloat16)
    jax.block_until_ready((out16, soft16))
    assert out16.shape == (batch, NUM_CLASSES) and soft16.shape == (batch, NUM_CLASSES)
    assert jnp.allclose(out16, ref_out, atol=5e-2, rtol=5e-2)
    assert jnp.allclose(soft16, ref_soft, atol=5e-2)

    print("KERNEL_OK")
</pallas_src>

<mosaic_0001>
module attributes {stable_mosaic.version = 11 : i64} {
  func.func @phobert_classi_kernel(%arg0: i32, %arg1: memref<128x64xf32, #tpu.memory_space<vmem>>, %arg2: memref<64x64xf32, #tpu.memory_space<vmem>>, %arg3: memref<1x64xf32, #tpu.memory_space<vmem>>, %arg4: memref<128x128xf32, #tpu.memory_space<vmem>>) attributes {dimension_semantics = [#tpu.dimension_semantics<parallel>], iteration_bounds = array<i64: 2>, scalar_prefetch = 0 : i64, scratch_operands = 0 : i64, tpu.core_type = #tpu.core_type<tc>, window_params = [{transform_indices = @transform_0, window_bounds = array<i64: 128, 64>}, {pipeline_mode = #tpu.pipeline_mode<synchronous>, transform_indices = @transform_1, window_bounds = array<i64: 64, 64>}, {pipeline_mode = #tpu.pipeline_mode<synchronous>, transform_indices = @transform_2, window_bounds = array<i64: 1, 64>}, {transform_indices = @transform_3, window_bounds = array<i64: 128, 128>}]} {
    %c0 = arith.constant 0 : index
    %c0_0 = arith.constant 0 : index
    %0 = vector.load %arg1[%c0, %c0_0] : memref<128x64xf32, #tpu.memory_space<vmem>>, vector<128x64xf32>
    %c0_1 = arith.constant 0 : index
    %c0_2 = arith.constant 0 : index
    %1 = vector.load %arg2[%c0_1, %c0_2] : memref<64x64xf32, #tpu.memory_space<vmem>>, vector<64x64xf32>
    %cst = arith.constant dense<0.000000e+00> : vector<128x64xf32>
    %2 = tpu.matmul %0, %1, %cst {dimension_numbers = #tpu.dot_dimension_numbers<[1], [0], [0], [1], [0, 0, 1, 1], [], []>} : vector<128x64xf32>, vector<64x64xf32>, vector<128x64xf32> -> vector<128x64xf32>
    %c0_3 = arith.constant 0 : index
    %c0_4 = arith.constant 0 : index
    %3 = vector.load %arg3[%c0_3, %c0_4] : memref<1x64xf32, #tpu.memory_space<vmem>>, vector<1x64xf32>
    %4 = vector.broadcast %3 : vector<1x64xf32> to vector<128x64xf32>
    %5 = arith.addf %2, %4 : vector<128x64xf32>
    %6 = tpu.iota {dimensions = array<i32: 1>} : vector<128x64xi32>
    %c3_i32 = arith.constant 3 : i32
    %7 = vector.broadcast %c3_i32 : i32 to vector<128x64xi32>
    %8 = arith.cmpi slt, %6, %7 : vector<128x64xi32>
    %cst_5 = arith.constant 0xFF800000 : f32
    %9 = vector.broadcast %cst_5 : f32 to vector<128x64xf32>
    %10 = arith.select %8, %5, %9 : vector<128x64xi1>, vector<128x64xf32>
    %cst_6 = arith.constant dense<0xFF800000> : vector<128xf32>
    %11 = vector.multi_reduction <maximumf>, %10, %cst_6 [1] : vector<128x64xf32> to vector<128xf32>
    %12 = vector.shape_cast %11 : vector<128xf32> to vector<128x1xf32>
    %13 = vector.broadcast %12 : vector<128x1xf32> to vector<128x64xf32>
    %14 = arith.subf %10, %13 : vector<128x64xf32>
    %15 = math.exp %14 : vector<128x64xf32>
    %cst_7 = arith.constant dense<0.000000e+00> : vector<128xf32>
    %16 = vector.multi_reduction <add>, %15, %cst_7 [1] : vector<128x64xf32> to vector<128xf32>
    %17 = vector.shape_cast %16 : vector<128xf32> to vector<128x1xf32>
    %18 = tpu.reciprocal %17 {approx = true} : vector<128x1xf32> -> vector<128x1xf32>
    %19 = vector.broadcast %18 : vector<128x1xf32> to vector<128x64xf32>
    %20 = arith.mulf %15, %19 : vector<128x64xf32>
    %c0_8 = arith.constant 0 : index
    %c0_9 = arith.constant 0 : index
    %21 = vector.load %arg4[%c0_8, %c0_9] : memref<128x128xf32, #tpu.memory_space<vmem>>, vector<128x64xf32>
    tpu.vector_store %arg4[%c0_8, %c0_9], %5 {strides = array<i32>} : memref<128x128xf32, #tpu.memory_space<vmem>>, vector<128x64xf32>,
    %c0_10 = arith.constant 0 : index
    %c64 = arith.constant 64 : index
    %22 = vector.load %arg4[%c0_10, %c64] : memref<128x128xf32, #tpu.memory_space<vmem>>, vector<128x64xf32>
    tpu.vector_store %arg4[%c0_10, %c64], %20 {strides = array<i32>} : memref<128x128xf32, #tpu.memory_space<vmem>>, vector<128x64xf32>,
    return
  }
  func.func @transform_0(%arg0: i32) -> (i32, i32) {
    %c0_i32 = arith.constant 0 : i32
    %c0_i32_0 = arith.constant 0 : i32
    return %arg0, %c0_i32 : i32, i32
  }
  func.func @transform_1(%arg0: i32) -> (i32, i32) {
    %c0_i32 = arith.constant 0 : i32
    %c0_i32_0 = arith.constant 0 : i32
    %c0_i32_1 = arith.constant 0 : i32
    return %c0_i32, %c0_i32_0 : i32, i32
  }
  func.func @transform_2(%arg0: i32) -> (i32, i32) {
    %c0_i32 = arith.constant 0 : i32
    %c0_i32_0 = arith.constant 0 : i32
    %c0_i32_1 = arith.constant 0 : i32
    return %c0_i32, %c0_i32_0 : i32, i32
  }
  func.func @transform_3(%arg0: i32) -> (i32, i32) {
    %c0_i32 = arith.constant 0 : i32
    %c0_i32_0 = arith.constant 0 : i32
    return %arg0, %c0_i32 : i32, i32
  }
}

</mosaic_0001>

<bundles_post_ra>
// kernel: phobert_classi.1
= control target key start
LH: loop header
LB: loop body
LE: loop exit
PB: predicated region body
PF: predicated region fallthrough
CT: control target
= control target key end

     0   :  { %s965_s12 = smov 0   ;;  %s1345_s0 = inlined_call_operand.vmem [shape: f32[256,64], index: 0, kind: input, shape index: {}]   ;;  %s1346_s1 = inlined_call_operand.vmem [shape: f32[64,64], index: 1, kind: input, shape index: {}]   ;;  %s1347_s2 = inlined_call_operand.vmem [shape: f32[1,64], index: 2, kind: input, shape index: {}]   ;;  %s1348_s3 = inlined_call_operand.vmem [shape: f32[256,128], index: 3, kind: output, shape index: {}]  }
   0x1 LB: > { %s747_s13 = sadd.s32 4294967295, %s942_s12   ;;  %p751_p0 = scmp.ge.s32.totalorder %s942_s12, 1  ;;  %s942_s12 = sphi %s965_s12, %s13_s12  }
   0x2   : > { %p138_p1 = scmp.lt.s32.totalorder %s942_s12, 3 }
   0x4   : > { %p139_p2 = pnand %p751_p0, %p138_p1 }
   0x5   : > { %v190_v0 = vld [vmem:[%s1346_s1] sm:$0xff] (!%p139_p2)  ;;  %v191_v1 = vld [vmem:[%s1346_s1 + $0x8] sm:$0xff] (!%p139_p2)  ;;  %v192_v2 = vld [vmem:[%s1346_s1 + $0x10] sm:$0xff] (!%p139_p2)  ;;  %s752_s20 = sshll.u32 (!%p139_p2), %s747_s13, 4  ;;  %vm205_vm0 = vcmask (!%p139_p2), 523264   ;;  %v399_v28 = vlaneseq (!%p139_p2)  ;;  %s944_s14 = smov (!%p139_p2), 64  }
   0x6   : > { %142 = sbr.rel (%p139_p2) target bundleno = 702 (0x2be), region = 32  ;;  %v839_v3 = vpack.c.bf16 (!%p139_p2), %v191_v1, %v190_v0  ;;  %v193_v4 = vld [vmem:[%s1346_s1 + $0x18] sm:$0xff] (!%p139_p2)  ;;  %p163_p3 = scmp.lt.s32.totalorder (!%p139_p2), %s752_s20, 31  ;;  %v194_v6 = vld [vmem:[%s1346_s1 + $0x20] sm:$0xff] (!%p139_p2)  ;;  %v195_v7 = vld [vmem:[%s1346_s1 + $0x28] sm:$0xff] (!%p139_p2)  ;;  %vm674_vm2 = vcmask (!%p139_p2), 1048064  }
   0x7   : > { %v843_v5 = vpack.c.bf16 (!%p139_p2), %v193_v4, %v192_v2  ;;  %v847_v8 = vpack.c.bf16 (!%p139_p2), %v195_v7, %v194_v6  ;;  %v196_v9 = vld [vmem:[%s1346_s1 + $0x30] sm:$0xff] (!%p139_p2)  ;;  %v197_v10 = vld [vmem:[%s1346_s1 + $0x38] sm:$0xff] (!%p139_p2)  ;;  %v1039_v29 = vand.u32 (!%p139_p2), 127, %v399_v28  ;;  %v1044_v30 = vld [vmem:[%s1347_s2] ss:$0 sm:$0xff] (!%p139_p2) }
   0x8   : > { %840 = vmatprep.subr.bf16.mxu0 (!%p139_p2), %v839_v3  ;;  %855 = vmatprep.subr.bf16.mxu1 (!%p139_p2), %v839_v3  ;;  %v851_v13 = vpack.c.bf16 (!%p139_p2), %v197_v10, %v196_v9 }
   0x9   : > { %842 = vmatpush3.bf16.msra.mxu0 (!%p139_p2), %v839_v3  ;;  %859 = vmatpush3.bf16.msra.mxu1 (!%p139_p2), %v839_v3  ;;  %vm401_vm1 = vcmp.lt.s32.totalorder (!%p139_p2), %v1039_v29, 3 }
   0xa   : > { %844 = vmatprep.subr.bf16.mxu0 (!%p139_p2), %v843_v5  ;;  %856 = vmatprep.subr.bf16.mxu1 (!%p139_p2), %v843_v5 }
   0xd   : > { %s1350_s20 = smov (!%p163_p3, %s752_s20), 31  ;;  %846 = vmatpush3.bf16.msra.mxu0 %v843_v5  ;;  %860 = vmatpush3.bf16.msra.mxu1 %v843_v5 }
   0xe   : > { %s753_s27 = sshll.u32 %s1350_s20, 3  ;;  %848 = vmatprep.subr.bf16.mxu0 %v847_v8  ;;  %857 = vmatprep.subr.bf16.mxu1 %v847_v8 }
   0xf   : > { %s1005_s7 = scalar_lea.vmem %s1345_s0, %s753_s27  ;;  %s1051_s13 = scalar_lea.vmem %s1348_s3, %s753_s27 }
  0x10   : > { %v174_v11 = vld [vmem:[%s1005_s7] sm:$0xff]  ;;  %v175_v14 = vld [vmem:[%s1005_s7 + $0x8] sm:$0xff]  ;;  %v176_v16 = vld [vmem:[%s1005_s7 + $0x10] sm:$0xff] }
  0x11   : > { %v182_v12 = vld [vmem:[%s1005_s7 + $0x40] sm:$0xff]  ;;  %815 = vmatprep.mubr.msk.f32.mxu0 %vm205_vm0, %v174_v11  ;;  %850 = vmatpush3.bf16.msra.mxu0 %v847_v8  ;;  %v183_v15 = vld [vmem:[%s1005_s7 + $0x48] sm:$0xff]  ;;  %v184_v17 = vld [vmem:[%s1005_s7 + $0x50] sm:$0xff] }
  0x12   : > { %827 = vmatprep.mubr.msk.f32.mxu1 %vm205_vm0, %v182_v12  ;;  %861 = vmatpush3.bf16.msra.mxu1 %v847_v8  ;;  %v177_v18 = vld [vmem:[%s1005_s7 + $0x18] sm:$0xff]  ;;  %v178_v20 = vld [vmem:[%s1005_s7 + $0x20] sm:$0xff]  ;;  %v179_v22 = vld [vmem:[%s1005_s7 + $0x28] sm:$0xff] }
  0x13   : > { %852 = vmatprep.subr.bf16.mxu0 %v851_v13  ;;  %858 = vmatprep.subr.bf16.mxu1 %v851_v13  ;;  %v185_v19 = vld [vmem:[%s1005_s7 + $0x58] sm:$0xff]  ;;  %v186_v21 = vld [vmem:[%s1005_s7 + $0x60] sm:$0xff]  ;;  %v187_v23 = vld [vmem:[%s1005_s7 + $0x68] sm:$0xff] }
  0x14   : > { %v180_v24 = vld [vmem:[%s1005_s7 + $0x30] sm:$0xff]  ;;  %v181_v26 = vld [vmem:[%s1005_s7 + $0x38] sm:$0xff] }
  0x15   : > { %854 = vmatpush3.bf16.msra.mxu0 %v851_v13  ;;  %v188_v25 = vld [vmem:[%s1005_s7 + $0x70] sm:$0xff]  ;;  %v189_v27 = vld [vmem:[%s1005_s7 + $0x78] sm:$0xff] }
  0x16   : > { %862 = vmatpush3.bf16.msra.mxu1 %v851_v13 }
  0x18   : > { %816 = vmatmul.mubr.msk.f32.vlgmr.msra.gmra.mrb[0].mxu0 %vm205_vm0, %v175_v14 }
  0x19   : > { %828 = vmatmul.mubr.msk.f32.vlgmr.msra.gmra.mrb[0].mxu1 %vm205_vm0, %v183_v15  ;;  %818 = vmatprep.mubr.msk.f32.mxu0 %vm205_vm0, %v176_v16 }
  0x1a   : > { %830 = vmatprep.mubr.msk.f32.mxu1 %vm205_vm0, %v184_v17 }
  0x1c   : > { %819 = vmatmul.mubr.msk.f32.gmra.mrb[2].mxu0 %vm205_vm0, %v177_v18 }
  0x1d   : > { %831 = vmatmul.mubr.msk.f32.gmra.mrb[2].mxu1 %vm205_vm0, %v185_v19  ;;  %821 = vmatprep.mubr.msk.f32.mxu0 %vm205_vm0, %v178_v20 }
  0x1e   : > { %833 = vmatprep.mubr.msk.f32.mxu1 %vm205_vm0, %v186_v21 }
  0x20   : > { %822 = vmatmul.mubr.msk.f32.gmra.mrb[4].mxu0 %vm205_vm0, %v179_v22 }
  0x21   : > { %834 = vmatmul.mubr.msk.f32.gmra.mrb[4].mxu1 %vm205_vm0, %v187_v23  ;;  %824 = vmatprep.mubr.msk.f32.mxu0 %vm205_vm0, %v180_v24 }
  0x22   : > { %836 = vmatprep.mubr.msk.f32.mxu1 %vm205_vm0, %v188_v25 }
  0x24   : > { %825 = vmatmul.mubr.msk.f32.gmra.mrb[6].mxu0 %vm205_vm0, %v181_v26 }
  0x25   : > { %837 = vmatmul.mubr.msk.f32.gmra.mrb[6].mxu1 %vm205_vm0, %v189_v27 }
  0xeb   : > { %v817_v31 = vpop.f32.mrb[0].mxu0 }
  0xec   : > { %v829_v32 = vpop.f32.mrb[0].mxu1  ;;  %v326_v33 = vadd.f32 %v817_v31, %v1044_v30  ;;  %v320_v35 = vpop.f32.mrb[1].mxu0 }
  0xed   : > { %v366_v34 = vadd.f32 %v829_v32, %v1044_v30  ;;  %v360_v36 = vpop.f32.mrb[1].mxu1  ;;  %v321_v37 = vadd.f32 %v1044_v30, %v320_v35 }
  0xee   : > { %v361_v38 = vadd.f32 %v1044_v30, %v360_v36  ;;  %595 = vst.msk [vmem:[%s1051_s13 + $0x8] sm:$0xff] %vm205_vm0, %v326_v33  ;;  %v1068_v40 = vsel %vm401_vm1, %v326_v33, -inf }
  0xef   : > { %603 = vst.msk [vmem:[%s1051_s13 + $0x48] sm:$0xff] %vm205_vm0, %v366_v34  ;;  %v1064_v39 = vsel %vm401_vm1, %v366_v34, -inf  ;;  %594 = vst.msk [vmem:[%s1051_s13] sm:$0xff] %vm205_vm0, %v321_v37  ;;  %v820_v41 = vpop.f32.mrb[2].mxu0  ;;  %v421_v43 = vsel %vm205_vm0, %v1068_v40, -inf  ;;  %v1082_v49 = vsel %vm401_vm1, %v321_v37, -inf }
  0xf0   : > { %602 = vst.msk [vmem:[%s1051_s13 + $0x40] sm:$0xff] %vm205_vm0, %v361_v38  ;;  %v445_v42 = vsel %vm205_vm0, %v1064_v39, -inf  ;;  %v832_v44 = vpop.f32.mrb[2].mxu1  ;;  %v336_v45 = vadd.f32 %v820_v41, %v1044_v30  ;;  %422 = vmax.xlane.f32.xlu0 %v421_v43  ;;  %v330_v46 = vpop.f32.mrb[3].mxu0  ;;  %v418_v55 = vsel %vm205_vm0, %v1082_v49, -inf  ;;  %v1108_v58 = vsel %vm401_vm1, %v361_v38, -inf }
  0xf1   : > { %446 = vmax.xlane.f32.xlu1 %v445_v42  ;;  %v376_v47 = vadd.f32 %v832_v44, %v1044_v30  ;;  %v370_v48 = vpop.f32.mrb[3].mxu1  ;;  %v331_v50 = vadd.f32 %v1044_v30, %v330_v46  ;;  %v442_v2 = vsel %vm205_vm0, %v1108_v58, -inf }
  0xf2   : > { %v371_v51 = vadd.f32 %v1044_v30, %v370_v48  ;;  %597 = vst.msk [vmem:[%s1051_s13 + $0x18] sm:$0xff] %vm205_vm0, %v336_v45  ;;  %v1092_v52 = vsel %vm401_vm1, %v336_v45, -inf }
  0xf3   : > { %605 = vst.msk [vmem:[%s1051_s13 + $0x58] sm:$0xff] %vm205_vm0, %v376_v47  ;;  %v1096_v53 = vsel %vm401_vm1, %v376_v47, -inf  ;;  %596 = vst.msk [vmem:[%s1051_s13 + $0x10] sm:$0xff] %vm205_vm0, %v331_v50  ;;  %v427_v54 = vsel %vm205_vm0, %v1092_v52, -inf  ;;  %v823_v56 = vpop.f32.mrb[4].mxu0  ;;  %v1128_v5 = vsel %vm401_vm1, %v331_v50, -inf }
  0xf4   : > { %604 = vst.msk [vmem:[%s1051_s13 + $0x50] sm:$0xff] %vm205_vm0, %v371_v51  ;;  %v835_v57 = vpop.f32.mrb[4].mxu1  ;;  %419 = vmax.xlane.f32.xlu0 %v418_v55  ;;  %v346_v59 = vadd.f32 %v823_v56, %v1044_v30  ;;  %v340_v60 = vpop.f32.mrb[5].mxu0  ;;  %v451_v63 = vsel %vm205_vm0, %v1096_v53, -inf  ;;  %v1132_v6 = vsel %vm401_vm1, %v371_v51, -inf  ;;  %v424_v15 = vsel %vm205_vm0, %v1128_v5, -inf }
  0xf5   : > { %428 = vmax.xlane.f32.xlu1 %v427_v54  ;;  %v386_v61 = vadd.f32 %v835_v57, %v1044_v30  ;;  %v380_v62 = vpop.f32.mrb[5].mxu1  ;;  %v341_v0 = vadd.f32 %v1044_v30, %v340_v60  ;;  %v448_v16 = vsel %vm205_vm0, %v1132_v6, -inf }
  0xf6   : > { %v381_v1 = vadd.f32 %v1044_v30, %v380_v62  ;;  %599 = vst.msk [vmem:[%s1051_s13 + $0x28] sm:$0xff] %vm205_vm0, %v346_v59  ;;  %v1140_v13 = vsel %vm401_vm1, %v346_v59, -inf }
  0xf7   : > { %607 = vst.msk [vmem:[%s1051_s13 + $0x68] sm:$0xff] %vm205_vm0, %v386_v61  ;;  %598 = vst.msk [vmem:[%s1051_s13 + $0x20] sm:$0xff] %vm205_vm0, %v341_v0  ;;  %v826_v3 = vpop.f32.mrb[6].mxu0  ;;  %v1144_v14 = vsel %vm401_vm1, %v341_v0, -inf  ;;  %v433_v17 = vsel %vm205_vm0, %v1140_v13, -inf  ;;  %v1164_v19 = vsel %vm401_vm1, %v386_v61, -inf }
  0xf8   : > { %606 = vst.msk [vmem:[%s1051_s13 + $0x60] sm:$0xff] %vm205_vm0, %v381_v1  ;;  %v838_v4 = vpop.f32.mrb[6].mxu1  ;;  %443 = vmax.xlane.f32.xlu0 %v442_v2  ;;  %v356_v7 = vadd.f32 %v826_v3, %v1044_v30  ;;  %v350_v8 = vpop.f32.mrb[7].mxu0  ;;  %v430_v18 = vsel %vm205_vm0, %v1144_v14, -inf  ;;  %v1168_v20 = vsel %vm401_vm1, %v381_v1, -inf  ;;  %v457_v21 = vsel %vm205_vm0, %v1164_v19, -inf }
  0xf9   : > { %452 = vmax.xlane.f32.xlu1 %v451_v63  ;;  %v396_v9 = vadd.f32 %v838_v4, %v1044_v30  ;;  %v390_v10 = vpop.f32.mrb[7].mxu1  ;;  %v351_v11 = vadd.f32 %v1044_v30, %v350_v8  ;;  %v454_v22 = vsel %vm205_vm0, %v1168_v20, -inf }
  0xfa   : > { %v391_v12 = vadd.f32 %v1044_v30, %v390_v10  ;;  %601 = vst.msk [vmem:[%s1051_s13 + $0x38] sm:$0xff] %vm205_vm0, %v356_v7  ;;  %v1176_v23 = vsel %vm401_vm1, %v356_v7, -inf }
  0xfb   : > { %609 = vst.msk [vmem:[%s1051_s13 + $0x78] sm:$0xff] %vm205_vm0, %v396_v9  ;;  %600 = vst.msk [vmem:[%s1051_s13 + $0x30] sm:$0xff] %vm205_vm0, %v351_v11  ;;  %v1180_v24 = vsel %vm401_vm1, %v351_v11, -inf  ;;  %v439_v25 = vsel %vm205_vm0, %v1176_v23, -inf  ;;  %v1188_v27 = vsel %vm401_vm1, %v396_v9, -inf }
  0xfc   : > { %608 = vst.msk [vmem:[%s1051_s13 + $0x70] sm:$0xff] %vm205_vm0, %v391_v12  ;;  %449 = vmax.xlane.f32.xlu0 %v448_v16  ;;  %v436_v26 = vsel %vm205_vm0, %v1180_v24, -inf  ;;  %v1192_v28 = vsel %vm401_vm1, %v391_v12, -inf  ;;  %v463_v30 = vsel %vm205_vm0, %v1188_v27, -inf }
  0xfd   : > { %425 = vmax.xlane.f32.xlu1 %v424_v15  ;;  %v460_v31 = vsel %vm205_vm0, %v1192_v28, -inf }
 0x100   : > { %431 = vmax.xlane.f32.xlu0 %v430_v18 }
 0x101   : > { %434 = vmax.xlane.f32.xlu1 %v433_v17 }
 0x104   : > { %455 = vmax.xlane.f32.xlu0 %v454_v22 }
 0x105   : > { %458 = vmax.xlane.f32.xlu1 %v457_v21 }
 0x108   : > { %437 = vmax.xlane.f32.xlu0 %v436_v26 }
 0x109   : > { %440 = vmax.xlane.f32.xlu1 %v439_v25 }
 0x10c   : > { %461 = vmax.xlane.f32.xlu0 %v460_v31 }
 0x10d   : > { %464 = vmax.xlane.f32.xlu1 %v463_v30 }
 0x17d   : > { %v423_v33 = vpop.xlane.xlu0 %422 }
 0x17e   : > { %v447_v32 = vpop.xlane.xlu1 %446  ;;  %v467_v35 = vsub.f32 %v1068_v40, %v423_v33 }
 0x17f   : > { %v475_v34 = vsub.f32 %v1064_v39, %v447_v32 }
 0x180   : > { %v484_v29 = vmul.f32 1.442695, %v467_v35 }
 0x181   : > { %v500_v36 = vmul.f32 1.442695, %v475_v34  ;;  %v420_v38 = vpop.xlane.xlu0 %419 }
 0x182   : > { %v429_v37 = vpop.xlane.xlu1 %428  ;;  %v466_v42 = vsub.f32 %v1082_v49, %v420_v38  ;;  %872 = vpow2.f32 %v484_v29 }
 0x183   : > { %v469_v41 = vsub.f32 %v1092_v52, %v429_v37  ;;  %874 = vpow2.f32 %v500_v36 }
 0x184   : > { %v482_v44 = vmul.f32 1.442695, %v466_v42 }
 0x185   : > { %v488_v43 = vmul.f32 1.442695, %v469_v41  ;;  %v444_v46 = vpop.xlane.xlu0 %443 }
 0x186   : > { %v453_v45 = vpop.xlane.xlu1 %452  ;;  %v474_v39 = vsub.f32 %v1108_v58, %v444_v46  ;;  %876 = vpow2.f32 %v482_v44 }
 0x187   : > { %v477_v47 = vsub.f32 %v1096_v53, %v453_v45  ;;  %878 = vpow2.f32 %v488_v43 }
 0x188   : > { %v498_v40 = vmul.f32 1.442695, %v474_v39 }
 0x189   : > { %v504_v48 = vmul.f32 1.442695, %v477_v47  ;;  %v450_v51 = vpop.xlane.xlu0 %449 }
 0x18a   : > { %v426_v50 = vpop.xlane.xlu1 %425  ;;  %v476_v49 = vsub.f32 %v1132_v6, %v450_v51  ;;  %880 = vpow2.f32 %v498_v40 }
 0x18b   : > { %v468_v52 = vsub.f32 %v1128_v5, %v426_v50  ;;  %882 = vpow2.f32 %v504_v48 }
 0x18c   : > { %v1206_v55 = vpop.eup %872  ;;  %v502_v56 = vmul.f32 1.442695, %v476_v49 }
 0x18d   : > { %v486_v54 = vmul.f32 1.442695, %v468_v52  ;;  %v432_v53 = vpop.xlane.xlu0 %431  ;;  %v1208_v59 = vpop.eup %874  ;;  %v517_v61 = vsel %vm205_vm0, %v1206_v55, 0.0 }
 0x18e   : > { %v435_v57 = vpop.xlane.xlu1 %434  ;;  %v470_v60 = vsub.f32 %v1144_v14, %v432_v53  ;;  %518 = vadd.xlane.f32.xlu1 %v517_v61  ;;  %v541_v3 = vsel %vm205_vm0, %v1208_v59, 0.0 }
 0x18f   : > { %884 = vpow2.f32 %v486_v54  ;;  %v471_v58 = vsub.f32 %v1140_v13, %v435_v57 }
 0x190   : > { %v1214_v63 = vpop.eup %876  ;;  %886 = vpow2.f32 %v502_v56  ;;  %v490_v0 = vmul.f32 1.442695, %v470_v60 }
 0x191   : > { %v492_v62 = vmul.f32 1.442695, %v471_v58  ;;  %v456_v2 = vpop.xlane.xlu0 %455  ;;  %v1218_v4 = vpop.eup %878  ;;  %v514_v7 = vsel %vm205_vm0, %v1214_v63, 0.0 }
 0x192   : > { %v459_v1 = vpop.xlane.xlu1 %458  ;;  %v478_v6 = vsub.f32 %v1168_v20, %v456_v2  ;;  %542 = vadd.xlane.f32.xlu1 %v541_v3  ;;  %515 = vadd.xlane.f32.xlu0 %v514_v7  ;;  %v523_v13 = vsel %vm205_vm0, %v1218_v4, 0.0 }
 0x193   : > { %888 = vpow2.f32 %v492_v62  ;;  %v479_v5 = vsub.f32 %v1164_v19, %v459_v1 }
 0x194   : > { %v1224_v9 = vpop.eup %880  ;;  %890 = vpow2.f32 %v490_v0  ;;  %v506_v10 = vmul.f32 1.442695, %v478_v6 }
 0x195   : > { %v508_v8 = vmul.f32 1.442695, %v479_v5  ;;  %v438_v12 = vpop.xlane.xlu0 %437  ;;  %v538_v16 = vsel %vm205_vm0, %v1224_v9, 0.0  ;;  %v1232_v17 = vpop.eup %882 }
 0x196   : > { %v441_v11 = vpop.xlane.xlu1 %440  ;;  %v472_v15 = vsub.f32 %v1180_v24, %v438_v12  ;;  %524 = vadd.xlane.f32.xlu1 %v523_v13  ;;  %539 = vadd.xlane.f32.xlu0 %v538_v16  ;;  %v547_v26 = vsel %vm205_vm0, %v1232_v17, 0.0 }
 0x197   : > { %892 = vpow2.f32 %v508_v8  ;;  %v473_v14 = vsub.f32 %v1176_v23, %v441_v11 }
 0x198   : > { %894 = vpow2.f32 %v506_v10  ;;  %v494_v20 = vmul.f32 1.442695, %v472_v15 }
 0x199   : > { %v1234_v18 = vpop.eup %884  ;;  %v496_v19 = vmul.f32 1.442695, %v473_v14  ;;  %v462_v22 = vpop.xlane.xlu0 %461 }
 0x19a   : > { %v465_v21 = vpop.xlane.xlu1 %464  ;;  %v520_v25 = vsel %vm205_vm0, %v1234_v18, 0.0  ;;  %v480_v24 = vsub.f32 %v1192_v28, %v462_v22  ;;  %v1242_v30 = vpop.eup %886  ;;  %548 = vadd.xlane.f32.xlu1 %v547_v26 }
 0x19b   : > { %896 = vpow2.f32 %v496_v19  ;;  %v481_v23 = vsub.f32 %v1188_v27, %v465_v21  ;;  %521 = vadd.xlane.f32.xlu0 %v520_v25  ;;  %v544_v27 = vsel %vm205_vm0, %v1242_v30, 0.0 }
 0x19c   : > { %898 = vpow2.f32 %v494_v20  ;;  %v510_v33 = vmul.f32 1.442695, %v480_v24 }
 0x19d   : > { %v1244_v31 = vpop.eup %888  ;;  %v512_v32 = vmul.f32 1.442695, %v481_v23 }
 0x19e   : > { %v529_v34 = vsel %vm205_vm0, %v1244_v31, 0.0  ;;  %v1250_v28 = vpop.eup %890 }
 0x19f   : > { %900 = vpow2.f32 %v512_v32  ;;  %530 = vadd.xlane.f32.xlu1 %v529_v34  ;;  %545 = vadd.xlane.f32.xlu0 %v544_v27  ;;  %v526_v29 = vsel %vm205_vm0, %v1250_v28, 0.0 }
 0x1a0   : > { %902 = vpow2.f32 %v510_v33 }
 0x1a1   : > { %v1252_v35 = vpop.eup %892 }
 0x1a2   : > { %v553_v36 = vsel %vm205_vm0, %v1252_v35, 0.0  ;;  %v1258_v37 = vpop.eup %894 }
 0x1a3   : > { %554 = vadd.xlane.f32.xlu1 %v553_v36  ;;  %527 = vadd.xlane.f32.xlu0 %v526_v29  ;;  %v550_v42 = vsel %vm205_vm0, %v1258_v37, 0.0 }
 0x1a5   : > { %v1260_v38 = vpop.eup %896 }
 0x1a6   : > { %v535_v41 = vsel %vm205_vm0, %v1260_v38, 0.0  ;;  %v1266_v43 = vpop.eup %898 }
 0x1a7   : > { %536 = vadd.xlane.f32.xlu1 %v535_v41  ;;  %551 = vadd.xlane.f32.xlu0 %v550_v42  ;;  %v532_v46 = vsel %vm205_vm0, %v1266_v43, 0.0 }
 0x1a9   : > { %v1268_v44 = vpop.eup %900 }
 0x1aa   : > { %v559_v45 = vsel %vm205_vm0, %v1268_v44, 0.0  ;;  %v1274_v47 = vpop.eup %902 }
 0x1ab   : > { %560 = vadd.xlane.f32.xlu1 %v559_v45  ;;  %533 = vadd.xlane.f32.xlu0 %v532_v46  ;;  %v556_v39 = vsel %vm205_vm0, %v1274_v47, 0.0 }
 0x1af   : > { %557 = vadd.xlane.f32.xlu0 %v556_v39 }
 0x21b   : > { %v519_v40 = vpop.xlane.xlu1 %518 }
 0x21c   : > { %904 = vrcp.f32 %v519_v40 }
 0x21f   : > { %v543_v48 = vpop.xlane.xlu1 %542  ;;  %v516_v50 = vpop.xlane.xlu0 %515 }
 0x220   : > { %906 = vrcp.f32 %v543_v48 }
 0x221   : > { %908 = vrcp.f32 %v516_v50 }
 0x223   : > { %v525_v51 = vpop.xlane.xlu1 %524  ;;  %v540_v52 = vpop.xlane.xlu0 %539 }
 0x224   : > { %910 = vrcp.f32 %v525_v51 }
 0x225   : > { %912 = vrcp.f32 %v540_v52 }
 0x226   : > { %v905_v49 = vpop.eup %904 }
 0x227   : > { %v549_v54 = vpop.xlane.xlu1 %548  ;;  %v579_v57 = vmul.f32 %v905_v49, %v1206_v55 }
 0x228   : > { %v522_v56 = vpop.xlane.xlu0 %521  ;;  %914 = vrcp.f32 %v549_v54 }
 0x229   : > { %628 = vrot.lane.b32.xlu1 %v579_v57, %s944_s14  ;;  %916 = vrcp.f32 %v522_v56 }
 0x22a   : > { %v907_v53 = vpop.eup %906 }
 0x22b   : > { %v909_v58 = vpop.eup %908  ;;  %v587_v62 = vmul.f32 %v907_v53, %v1208_v59 }
 0x22c   : > { %v531_v60 = vpop.xlane.xlu1 %530  ;;  %v546_v61 = vpop.xlane.xlu0 %545  ;;  %v578_v0 = vmul.f32 %v909_v58, %v1214_v63 }
 0x22d   : > { %918 = vrcp.f32 %v546_v61  ;;  %644 = vrot.lane.b32.xlu1 %v587_v62, %s944_s14 }
 0x22e   : > { %v911_v1 = vpop.eup %910  ;;  %920 = vrcp.f32 %v531_v60  ;;  %626 = vrot.lane.b32.xlu0 %v578_v0, %s944_s14 }
 0x22f   : > { %v913_v55 = vpop.eup %912  ;;  %v581_v5 = vmul.f32 %v911_v1, %v1218_v4 }
 0x230   : > { %v555_v2 = vpop.xlane.xlu1 %554  ;;  %v528_v3 = vpop.xlane.xlu0 %527  ;;  %v586_v6 = vmul.f32 %v913_v55, %v1224_v9 }
 0x231   : > { %922 = vrcp.f32 %v528_v3  ;;  %632 = vrot.lane.b32.xlu1 %v581_v5, %s944_s14 }
 0x232   : > { %v915_v59 = vpop.eup %914  ;;  %924 = vrcp.f32 %v555_v2  ;;  %642 = vrot.lane.b32.xlu0 %v586_v6, %s944_s14 }
 0x233   : > { %v589_v8 = vmul.f32 %v915_v59, %v1232_v17  ;;  %v917_v10 = vpop.eup %916 }
 0x234   : > { %v537_v63 = vpop.xlane.xlu1 %536  ;;  %v552_v7 = vpop.xlane.xlu0 %551  ;;  %v580_v9 = vmul.f32 %v917_v10, %v1234_v18 }
 0x235   : > { %926 = vrcp.f32 %v552_v7  ;;  %648 = vrot.lane.b32.xlu1 %v589_v8, %s944_s14 }
 0x236   : > { %928 = vrcp.f32 %v537_v63 }
 0x237   : > { %v919_v11 = vpop.eup %918 }
 0x238   : > { %v561_v4 = vpop.xlane.xlu1 %560  ;;  %v534_v12 = vpop.xlane.xlu0 %533  ;;  %v588_v14 = vmul.f32 %v919_v11, %v1242_v30 }
 0x239   : > { %v921_v13 = vpop.eup %920  ;;  %930 = vrcp.f32 %v534_v12  ;;  %630 = vrot.lane.b32.xlu1 %v580_v9, %s944_s14 }
 0x23a   : > { %932 = vrcp.f32 %v561_v4  ;;  %646 = vrot.lane.b32.xlu0 %v588_v14, %s944_s14  ;;  %v583_v17 = vmul.f32 %v921_v13, %v1244_v31 }
 0x23b   : > { %v923_v15 = vpop.eup %922 }
 0x23c   : > { %v558_v16 = vpop.xlane.xlu0 %557  ;;  %v925_v19 = vpop.eup %924  ;;  %v582_v20 = vmul.f32 %v923_v15, %v1250_v28 }
 0x23d   : > { %934 = vrcp.f32 %v558_v16  ;;  %636 = vrot.lane.b32.xlu1 %v583_v17, %s944_s14  ;;  %v591_v21 = vmul.f32 %v925_v19, %v1252_v35 }
 0x23e   : > { %634 = vrot.lane.b32.xlu0 %v582_v20, %s944_s14 }
 0x23f   : > { %v927_v18 = vpop.eup %926 }
 0x240   : > { %v929_v22 = vpop.eup %928  ;;  %v590_v25 = vmul.f32 %v927_v18, %v1258_v37 }
 0x241   : > { %652 = vrot.lane.b32.xlu1 %v591_v21, %s944_s14  ;;  %v585_v24 = vmul.f32 %v929_v22, %v1260_v38 }
 0x242   : > { %650 = vrot.lane.b32.xlu0 %v590_v25, %s944_s14 }
 0x243   : > { %v931_v23 = vpop.eup %930 }
 0x244   : > { %v933_v26 = vpop.eup %932  ;;  %v584_v30 = vmul.f32 %v931_v23, %v1266_v43 }
 0x245   : > { %640 = vrot.lane.b32.xlu1 %v585_v24, %s944_s14  ;;  %v593_v32 = vmul.f32 %v933_v26, %v1268_v44 }
 0x246   : > { %638 = vrot.lane.b32.xlu0 %v584_v30, %s944_s14 }
 0x247   : > { %v935_v31 = vpop.eup %934 }
 0x248   : > { %v592_v33 = vmul.f32 %v935_v31, %v1274_v47 }
 0x249   : > { %656 = vrot.lane.b32.xlu1 %v593_v32, %s944_s14 }
 0x24a   : > { %654 = vrot.lane.b32.xlu0 %v592_v33, %s944_s14 }
 0x29b   : > { %v629_v34 = vpop.permute.xlu1 %628 }
 0x29c   : > { %676 = vst.msk [vmem:[%s1051_s13 + $0x8] sm:$0xff] %vm674_vm2, %v629_v34 }
 0x29f   : > { %v645_v27 = vpop.permute.xlu1 %644 }
 0x2a0   : > { %684 = vst.msk [vmem:[%s1051_s13 + $0x48] sm:$0xff] %vm674_vm2, %v645_v27  ;;  %v627_v28 = vpop.permute.xlu0 %626 }
 0x2a1   : > { %675 = vst.msk [vmem:[%s1051_s13] sm:$0xff] %vm674_vm2, %v627_v28 }
 0x2a3   : > { %v633_v35 = vpop.permute.xlu1 %632 }
 0x2a4   : > { %678 = vst.msk [vmem:[%s1051_s13 + $0x18] sm:$0xff] %vm674_vm2, %v633_v35  ;;  %v643_v36 = vpop.permute.xlu0 %642 }
 0x2a5   : > { %683 = vst.msk [vmem:[%s1051_s13 + $0x40] sm:$0xff] %vm674_vm2, %v643_v36 }
 0x2a7   : > { %v649_v29 = vpop.permute.xlu1 %648 }
 0x2a8   : > { %686 = vst.msk [vmem:[%s1051_s13 + $0x58] sm:$0xff] %vm674_vm2, %v649_v29 }
 0x2ab   : > { %v631_v37 = vpop.permute.xlu1 %630 }
 0x2ac   : > { %677 = vst.msk [vmem:[%s1051_s13 + $0x10] sm:$0xff] %vm674_vm2, %v631_v37  ;;  %v647_v38 = vpop.permute.xlu0 %646 }
 0x2ad   : > { %685 = vst.msk [vmem:[%s1051_s13 + $0x50] sm:$0xff] %vm674_vm2, %v647_v38 }
 0x2af   : > { %v637_v41 = vpop.permute.xlu1 %636 }
 0x2b0   : > { %680 = vst.msk [vmem:[%s1051_s13 + $0x28] sm:$0xff] %vm674_vm2, %v637_v41  ;;  %v635_v42 = vpop.permute.xlu0 %634 }
 0x2b1   : > { %679 = vst.msk [vmem:[%s1051_s13 + $0x20] sm:$0xff] %vm674_vm2, %v635_v42 }
 0x2b3   : > { %v653_v43 = vpop.permute.xlu1 %652 }
 0x2b4   : > { %688 = vst.msk [vmem:[%s1051_s13 + $0x68] sm:$0xff] %vm674_vm2, %v653_v43  ;;  %v651_v44 = vpop.permute.xlu0 %650 }
 0x2b5   : > { %687 = vst.msk [vmem:[%s1051_s13 + $0x60] sm:$0xff] %vm674_vm2, %v651_v44 }
 0x2b7   : > { %v641_v45 = vpop.permute.xlu1 %640 }
 0x2b8   : > { %682 = vst.msk [vmem:[%s1051_s13 + $0x38] sm:$0xff] %vm674_vm2, %v641_v45  ;;  %v639_v46 = vpop.permute.xlu0 %638 }
 0x2b9   : > { %681 = vst.msk [vmem:[%s1051_s13 + $0x30] sm:$0xff] %vm674_vm2, %v639_v46 }
 0x2bb   : > { %v657_v47 = vpop.permute.xlu1 %656 }
 0x2bc   : > { %690 = vst.msk [vmem:[%s1051_s13 + $0x78] sm:$0xff] %vm674_vm2, %v657_v47  ;;  %v655_v39 = vpop.permute.xlu0 %654 }
 0x2bd   : > { %689 = vst.msk [vmem:[%s1051_s13 + $0x70] sm:$0xff] %vm674_vm2, %v655_v39 }
 0x2be PF: > { %s13_s12 = sadd.s32 1, %s942_s12  }
 0x2bf   : > { %p10_p4 = scmp.ge.s32.totalorder %s13_s12, 4  }
 0x2c1   :  { %12 = sbr.rel (!%p10_p4) target bundleno = 1 (0x1), region = 62 }

</bundles_post_ra>
